<compile_context>
chip_gen: v6e
topology: v6e:2x2x1
jax: 0.10.0
libtpu: 0.0.40
codegen_flags: <defaults>
</compile_context>

<pallas_src>
import functools

import jax
import jax.numpy as jnp
from jax.experimental import pallas as pl
from jax.experimental.pallas import tpu as pltpu


def _round_up(v, m):
    return ((v + m - 1) // m) * m


def _conv1d_deriv_kernel(w_ref, x_ref, o_ref, *, ksize, l_out):
    """K-tap valid cross-correlation on a (rows, lanes) slab.

    w_ref : SMEM (ksize,) f32       -- taps, pre-scaled by 1/resol
    x_ref : VMEM (TN, L_in_pad)     -- input rows (lane-dense, 128-multiple)
    o_ref : VMEM (TN, l_out)        -- l_out is a multiple of 128 -> unmasked stores
    """
    # Tap 0 initializes the accumulator (no extra zeros pass); each tap slices the
    # ref directly so only one shifted slab is live at a time.
    acc = w_ref[0] * x_ref[:, pl.ds(0, l_out)].astype(jnp.float32)
    if ksize <= 8:
        for k in range(1, ksize):
            acc = acc + w_ref[k] * x_ref[:, pl.ds(k, l_out)].astype(jnp.float32)
    else:
        # Large-K path: rolled loop bounds live ranges (not traced for the K=3 default).
        def body(k, a):
            return a + w_ref[k] * x_ref[:, pl.ds(k, l_out)].astype(jnp.float32)
        acc = jax.lax.fori_loop(1, ksize, body, acc)
    o_ref[...] = acc.astype(o_ref.dtype)


def conv1d_derivative(x, der_filter, resol, *, row_block=None):
    """Pallas equivalent of Conv1dDerivative.forward.

    x          : (N, 1, L) float array  (PyTorch NCL conv1d layout)
    der_filter : (1, 1, K) float array  (PyTorch conv1d weight layout)
    resol      : python float
    returns    : (N, 1, L - K + 1)
    """
    n, c, l = x.shape
    assert c == 1, "Conv1dDerivative uses a single input channel"
    k = int(der_filter.shape[-1])
    l_out = l - k + 1
    assert l_out >= 1, "input shorter than the filter"

    # Fold the 1/resol scale into the taps (removes a per-element divide pass).
    w = jnp.asarray(der_filter, jnp.float32).reshape(k) / jnp.float32(resol)

    # Lane-dense output: pad L_out to a 128 multiple so stores are unmasked vst.
    l_out_pad = _round_up(l_out, 128)
    # Input must cover every tap window [k, k + l_out_pad); round to 128 lanes so
    # the input DMA is lane-dense as well.
    l_in_pad = _round_up(l_out_pad + k - 1, 128)

    # Batch tiling: row blocks are a multiple of 8 sublanes, sized so the
    # double-buffered in+out blocks stay well inside the smallest scoped-VMEM
    # default (16 MiB on v5e) -- no vmem_limit_bytes override required.
    if row_block is None:
        budget = 8 * 1024 * 1024                     # bytes for pipelined blocks
        per_row = 2 * 4 * (l_in_pad + l_out_pad)     # 2x buffers, f32 worst case
        row_block = max(8, min(512, (budget // per_row) // 8 * 8))
    row_block = min(row_block, _round_up(n, 8))
    n_pad = _round_up(n, row_block)

    # Zero-pad rows/columns; padded regions produce values that are sliced off below.
    x2d = jnp.zeros((n_pad, l_in_pad), dtype=x.dtype).at[:n, :l].set(x.reshape(n, l))

    out2d = pl.pallas_call(
        functools.partial(_conv1d_deriv_kernel, ksize=k, l_out=l_out_pad),
        out_shape=jax.ShapeDtypeStruct((n_pad, l_out_pad), x.dtype),
        grid=(n_pad // row_block,),
        in_specs=[
            # Small fixed filter taps -> SMEM (cheap scalar reads, available every step).
            pl.BlockSpec(memory_space=pltpu.MemorySpace.SMEM),
            # Row-tiled input slab; lane dim is a 128 multiple (dense DMA).
            pl.BlockSpec((row_block, l_in_pad), lambda i: (i, 0)),
        ],
        # Row-tiled, lane-dense (128-multiple) output blocks -> unmasked stores.
        out_specs=pl.BlockSpec((row_block, l_out_pad), lambda i: (i, 0)),
        compiler_params=pltpu.CompilerParams(
            # Row blocks are independent -> shard across TensorCores (v7x megacore).
            dimension_semantics=("parallel",),
        ),
    )(w, x2d)

    return out2d[:n, :l_out].reshape(n, 1, l_out)


if __name__ == "__main__":
    # Deterministic parameters (as the torch module's __init__ would receive them):
    # a central-difference derivative filter and a resolution step.
    kernel_size = 3
    der_filter = jnp.asarray([[[-1.0, 0.0, 1.0]]], dtype=jnp.float32)  # (1, 1, 3)
    dx = 0.01
    resol = 2.0 * dx  # typical "DerFilter / (2*dx)" usage

    # Small deterministic input consistent with Conv1d: (batch=2, channels=1, length=16)
    key = jax.random.PRNGKey(0)
    x = jax.random.normal(key, (2, 1, 16), dtype=jnp.float32)

    y = conv1d_derivative(x, der_filter, resol)
    y = jax.block_until_ready(y)

    # Cross-check against a plain-JAX reference of the same math.
    l_out = x.shape[-1] - kernel_size + 1
    wref = der_filter.reshape(kernel_size)
    ref = sum(wref[k] * x[:, :, k:k + l_out] for k in range(kernel_size)) / resol
    assert y.shape == (2, 1, l_out)
    assert jnp.allclose(y, ref, atol=1e-5, rtol=1e-5)

    print("KERNEL_OK")
</pallas_src>

<mosaic_0001>
module attributes {stable_mosaic.version = 11 : i64} {
  func.func @_conv1d_deriv_kernel(%arg0: i32, %arg1: memref<3xf32, #tpu.memory_space<smem>>, %arg2: memref<8x256xf32, #tpu.memory_space<vmem>>, %arg3: memref<8x128xf32, #tpu.memory_space<vmem>>) attributes {dimension_semantics = [#tpu.dimension_semantics<parallel>], iteration_bounds = array<i64: 1>, scalar_prefetch = 0 : i64, scratch_operands = 0 : i64, tpu.core_type = #tpu.core_type<tc>, window_params = [{transform_indices = @transform_0, window_bounds = array<i64: 3>}, {transform_indices = @transform_1, window_bounds = array<i64: 8, 256>}, {transform_indices = @transform_2, window_bounds = array<i64: 8, 128>}]} {
    %c0 = arith.constant 0 : index
    %0 = memref.load %arg1[%c0] : memref<3xf32, #tpu.memory_space<smem>>
    %c0_0 = arith.constant 0 : index
    %c0_1 = arith.constant 0 : index
    %1 = vector.load %arg2[%c0_0, %c0_1] : memref<8x256xf32, #tpu.memory_space<vmem>>, vector<8x128xf32>
    %2 = vector.broadcast %0 : f32 to vector<8x128xf32>
    %3 = arith.mulf %2, %1 : vector<8x128xf32>
    %c1 = arith.constant 1 : index
    %4 = memref.load %arg1[%c1] : memref<3xf32, #tpu.memory_space<smem>>
    %c0_2 = arith.constant 0 : index
    %c1_3 = arith.constant 1 : index
    %5 = vector.load %arg2[%c0_2, %c1_3] : memref<8x256xf32, #tpu.memory_space<vmem>>, vector<8x128xf32>
    %6 = vector.broadcast %4 : f32 to vector<8x128xf32>
    %7 = arith.mulf %6, %5 : vector<8x128xf32>
    %8 = arith.addf %3, %7 : vector<8x128xf32>
    %c2 = arith.constant 2 : index
    %9 = memref.load %arg1[%c2] : memref<3xf32, #tpu.memory_space<smem>>
    %c0_4 = arith.constant 0 : index
    %c2_5 = arith.constant 2 : index
    %10 = vector.load %arg2[%c0_4, %c2_5] : memref<8x256xf32, #tpu.memory_space<vmem>>, vector<8x128xf32>
    %11 = vector.broadcast %9 : f32 to vector<8x128xf32>
    %12 = arith.mulf %11, %10 : vector<8x128xf32>
    %13 = arith.addf %8, %12 : vector<8x128xf32>
    %c0_6 = arith.constant 0 : index
    %c0_7 = arith.constant 0 : index
    %14 = vector.load %arg3[%c0_6, %c0_7] : memref<8x128xf32, #tpu.memory_space<vmem>>, vector<8x128xf32>
    tpu.vector_store %arg3[%c0_6, %c0_7], %13 {strides = array<i32>} : memref<8x128xf32, #tpu.memory_space<vmem>>, vector<8x128xf32>,
    return
  }
  func.func @transform_0(%arg0: i32) -> i32 {
    %c0_i32 = arith.constant 0 : i32
    %c0_i32_0 = arith.constant 0 : i32
    return %c0_i32 : i32
  }
  func.func @transform_1(%arg0: i32) -> (i32, i32) {
    %c0_i32 = arith.constant 0 : i32
    %c0_i32_0 = arith.constant 0 : i32
    return %arg0, %c0_i32 : i32, i32
  }
  func.func @transform_2(%arg0: i32) -> (i32, i32) {
    %c0_i32 = arith.constant 0 : i32
    %c0_i32_0 = arith.constant 0 : i32
    return %arg0, %c0_i32 : i32, i32
  }
}

</mosaic_0001>

<bundles_post_ra>
// kernel: tpu_custom_call.1
= control target key start
LH: loop header
LB: loop body
LE: loop exit
PB: predicated region body
PF: predicated region fallthrough
CT: control target
= control target key end

     0   :  { %7 = vsyncpa [#allocation5], 0  ;;  %s176_s0 = inlined_call_operand.hbm [shape: f32[3], index: 0, kind: input, shape index: {}]   ;;  %s177_s1 = inlined_call_operand.hbm [shape: f32[8,256], index: 1, kind: input, shape index: {}]   ;;  %s178_s2 = inlined_call_operand.hbm [shape: f32[8,128], index: 2, kind: output, shape index: {}]  }
   0x1   :  { %8 = vsyncpa [#allocation3], 0 }
   0x2   :  { %9 = vsyncpa [#allocation4], 0  ;;  %s147_s9 = smov [#allocation2]   ;;  %s148_s12 = smov [#allocation6]  }
   0x3   :  { %17 = dma.hbm_to_smem %s176_s0, 16, %s147_s9, [#allocation5]  }
   0x4   :  { %s24_s13 = sshll.u32 %s148_s12, 4  ;;  %s25_s13 = int_to_ptr.vmem [resolvable:$true] %s24_s13 }
   0x5   :  { %s109_s14 = scalar_lea.vmem %s25_s13, 256  ;;  %p114_p1 = scmp.lt.s32.totalorder %s25_s13, %s25_s13 }
   0x6   :  { %p110_p0 = scmp.ne.s32.totalorder %s25_s13, %s109_s14  ;;  %p115_p2 = scmp.lt.s32.totalorder %s109_s14, %s109_s14 }
   0x8   :  { %p116_p3 = por %p115_p2, %p114_p1 }
   0xa   :  { %p117_p4 = pnand %p116_p3, %p110_p0 }
   0xc   :  { %120 = shalt.err (!%p117_p4)
}
   0xd   :  { %27 = dma.hbm_to_vmem [thread:$0]  %s177_s1, 256, %s25_s13, [#allocation3]  }
   0xe   :  { %141 = dma.done.wait [#allocation5], 16  }
   0xf   :  { %142 = vsyncadd [#allocation5], 4294967280 }
  0x10   :  { %143 = dma.done.wait [#allocation3], 256  }
  0x11   :  { %144 = vsyncadd [#allocation3], 4294967040 }
  0x12   :  { %34 = sfence }
  0x13   :  { %s87_s0 = sld [smem:[#allocation2 + $0x2]]  ;;  %v40_v0 = vld [vmem:[#allocation6] sm:$0xff]  ;;  %v41_v1 = vld [vmem:[#allocation6 + $0x8] sm:$0xff]  ;;  %s149_s18 = smov 126   ;;  %vm51_vm0 = vcmask 1039360   ;;  %vm65_vm1 = vcmask 1031168  }
  0x14   :  { %s86_s17 = sld [smem:[#allocation2 + $0x1]]  ;;  %s150_s19 = smov 127  }
  0x15   :  { %s35_s1 = sld [smem:[#allocation2]]  ;;  %s151_s20 = smov [#allocation7]  }
  0x16   :  { %s76_s21 = sshll.u32 %s151_s20, 4  ;;  %s77_s21 = int_to_ptr.vmem [resolvable:$true] %s76_s21 }
  0x17   :  { %s121_s22 = scalar_lea.vmem %s77_s21, 128  ;;  %p126_p6 = scmp.lt.s32.totalorder %s77_s21, %s77_s21 }
  0x18   :  { %p122_p5 = scmp.ne.s32.totalorder %s77_s21, %s121_s22  ;;  %p127_p7 = scmp.lt.s32.totalorder %s121_s22, %s121_s22 }
  0x19   :  { %v56_v2 = vstv %s87_s0 }
  0x1a   :  { %v57_v3 = vmul.f32 %v56_v2, %v40_v0  ;;  %v42_v4 = vstv %s86_s17  ;;  %v58_v6 = vmul.f32 %v56_v2, %v41_v1  ;;  %p128_p8 = por %p127_p7, %p126_p6 }
  0x1b   :  { %v43_v5 = vmul.f32 %v42_v4, %v40_v0  ;;  %v44_v7 = vmul.f32 %v42_v4, %v41_v1  ;;  %v37_v9 = vstv %s35_s1 }
  0x1c   :  { %61 = vrot.lane.b32.xlu1 %v57_v3, %s149_s18  ;;  %v38_v11 = vmul.f32 %v40_v0, %v37_v9  ;;  %p129_p9 = pnand %p128_p8, %p122_p5 }
  0x1d   :  { %47 = vrot.lane.b32.xlu0 %v43_v5, %s150_s19 }
  0x20   :  { %63 = vrot.lane.b32.xlu1 %v58_v6, %s149_s18 }
  0x21   :  { %49 = vrot.lane.b32.xlu0 %v44_v7, %s150_s19 }
  0x8e   :  { %v62_v8 = vpop.permute.xlu1 %61 }
  0x8f   :  { %v48_v10 = vpop.permute.xlu0 %47 }
  0x92   :  { %v64_v12 = vpop.permute.xlu1 %63 }
  0x93   :  { %v50_v13 = vpop.permute.xlu0 %49  ;;  %v66_v16 = vsel %vm65_vm1, %v62_v8, %v64_v12 }
  0x94   :  { %v52_v14 = vsel %vm51_vm0, %v48_v10, %v50_v13 }
  0x95   :  { %v54_v15 = vadd.f32 %v52_v14, %v38_v11 }
  0x97   :  { %v68_v17 = vadd.f32 %v66_v16, %v54_v15 }
  0x99   :  { %69 = vst [vmem:[#allocation7] sm:$0xff] %v68_v17 }
  0x9a   :  { %132 = shalt.err (!%p129_p9)
}
  0x9b   :  { %79 = dma.vmem_to_hbm [thread:$0]  %s77_s21, 128, %s178_s2, [#allocation4]  }
  0x9c   :  { %145 = dma.done.wait [#allocation4], 128  }
  0x9d   :  { %146 = vsyncadd [#allocation4], 4294967168 }
  0x9e   :  { %83 = vsyncpa [#allocation3], 1 }
  0x9f   :  { %84 = vsyncpa [#allocation4], 1 }
  0xa0   :  { %85 = vsyncpa [#allocation5], 1 }

</bundles_post_ra>
